<compile_context>
chip_gen: v6e
topology: v6e:2x2x1
jax: 0.10.0
libtpu: 0.0.40
codegen_flags: <defaults>
</compile_context>

<pallas_src>
import math

import jax
import jax.numpy as jnp
from jax.experimental import pallas as pl
from jax.experimental.pallas import tpu as pltpu


# ----------------------------- tiling helpers --------------------------------

def _round_up(x, m):
    return -(-x // m) * m


def _choose_row_tile(n_rows, row_bytes, target_bytes, sublane):
    """Pick the row (second-to-last) block dim.

    Constraints / preferences:
      * tile is a multiple of `sublane` OR equals n_rows (TPU (8,128) rule);
      * tile * row_bytes stays near `target_bytes`;
      * grid length pl.cdiv(n_rows, tile) is kept even when > 1 so both v7x
        TensorCores get balanced work.  The grid uses cdiv, so the tile does
        NOT have to divide n_rows (the last block may be partial).
    """
    if n_rows <= sublane:
        return n_rows                      # equals the full dim -> always legal
    if n_rows * row_bytes <= target_bytes:
        # Whole array fits one tile; still give the 2nd v7x TC work if we can.
        if n_rows >= 2 * sublane:
            return _round_up(-(-n_rows // 2), sublane)
        return n_rows
    tile = max(sublane, (target_bytes // row_bytes) // sublane * sublane)
    steps = -(-n_rows // tile)
    if steps > 1 and steps % 2 == 1:
        # Shrink slightly to reach an even step count (balanced across 2 TCs).
        cand = _round_up(-(-n_rows // (steps + 1)), sublane)
        if cand >= sublane and (-(-n_rows // cand)) % 2 == 0:
            tile = cand
    return tile


# --------------------------------- kernel ------------------------------------

def _film_kernel(x_ref, scale_ref, shift_ref, o_ref):
    # x_ref/o_ref: (R, L) tile.
    # conv path : scale/shift are (R, 1)  -> broadcast along lanes.
    # dense path: scale/shift are (1, L)  -> broadcast along sublanes.
    o_ref[...] = x_ref[...] * scale_ref[...] + shift_ref[...]


_DEFAULT_TILE_BYTES = 4 << 20        # ~4 MiB x/out tiles (good on v5e/v6e/v7x)
_DEFAULT_VMEM_LIMIT = 48 << 20       # raise scoped VMEM; < 64 MiB v7x physical


def _sublane_pack(itemsize):
    return max(8, 32 // itemsize)    # 8 for f32, 16 for bf16, 32 for int8


# ------------------------------ conv=True path --------------------------------

def film_conv(x, scale_bw, shift_bw, num_samples, *,
              target_tile_bytes=_DEFAULT_TILE_BYTES,
              vmem_limit_bytes=_DEFAULT_VMEM_LIMIT):
    """x: (N, C, H, W) NCHW with N = num_samples*batch (sample-major);
       scale_bw/shift_bw: (batch, C) per-task rows gathered from the table."""
    N, C, H, W = x.shape
    HW = H * W
    batch = scale_bw.shape[0]
    assert N == num_samples * batch, (
        "x rows must be sample-major: N == num_samples * batch "
        "(matches torch .repeat(num_samples, 1, 1, 1))")
    dtype = x.dtype
    itemsize = jnp.dtype(dtype).itemsize
    rows = N * C

    # Flatten to 2-D: sublanes come from the big N*C axis, lanes = H*W.
    x2 = x.reshape(rows, HW)
    # torch: scale.view(-1, C, 1, 1).repeat(num_samples, 1, 1, 1) (sample-major)
    # NOTE: pre-cast to x.dtype; with bf16 activations this differs by <=1 ulp
    # from torch's f32-parameter multiply-add.
    scale = jnp.tile(scale_bw.astype(dtype), (num_samples, 1)).reshape(rows, 1)
    shift = jnp.tile(shift_bw.astype(dtype), (num_samples, 1)).reshape(rows, 1)

    sublane = _sublane_pack(itemsize)
    row_bytes = HW * itemsize
    tr = _choose_row_tile(rows, row_bytes, target_tile_bytes, sublane)
    grid = (pl.cdiv(rows, tr),)

    size = rows * HW
    cost = pl.CostEstimate(
        flops=2 * size,
        transcendentals=0,
        bytes_accessed=(2 * size + 2 * rows) * itemsize,
    )

    out = pl.pallas_call(
        _film_kernel,
        out_shape=jax.ShapeDtypeStruct((rows, HW), dtype),
        grid=grid,
        in_specs=[
            pl.BlockSpec((tr, HW), lambda n: (n, 0)),
            pl.BlockSpec((tr, 1), lambda n: (n, 0)),   # tiny per-step block
            pl.BlockSpec((tr, 1), lambda n: (n, 0)),   # tiny per-step block
        ],
        out_specs=pl.BlockSpec((tr, HW), lambda n: (n, 0)),
        compiler_params=pltpu.CompilerParams(
            dimension_semantics=("parallel",),
            vmem_limit_bytes=vmem_limit_bytes),
        cost_estimate=cost,
    )(x2, scale, shift)
    return out.reshape(N, C, H, W)


# ----------------------------- conv=False path --------------------------------

def film_dense(x, scale_bw, shift_bw, *,
               target_tile_bytes=_DEFAULT_TILE_BYTES,
               vmem_limit_bytes=_DEFAULT_VMEM_LIMIT):
    """x: (num_samples, batch, width); scale_bw/shift_bw: (batch, width)."""
    S, B, Wd = x.shape
    BW = B * Wd
    dtype = x.dtype
    itemsize = jnp.dtype(dtype).itemsize

    x2 = x.reshape(S, BW)
    scale = scale_bw.astype(dtype).reshape(1, BW)
    shift = shift_bw.astype(dtype).reshape(1, BW)

    rows, lanes = S, BW
    pad_lanes = 0
    if BW % 128 != 0:
        # Make the output lane width a true multiple of 128 (unmasked stores):
        # 1) fold sample rows into lanes when the sample count allows it;
        # 2) otherwise pad the lane dim and slice it off afterwards.
        k = 128 // math.gcd(BW, 128)
        if S % k == 0:
            rows, lanes = S // k, k * BW
            x2 = x2.reshape(rows, lanes)
            scale = jnp.tile(scale, (1, k))   # same (B*W) vector, repeated k x
            shift = jnp.tile(shift, (1, k))
        else:
            pad_lanes = _round_up(BW, 128) - BW
            x2 = jnp.pad(x2, ((0, 0), (0, pad_lanes)))
            scale = jnp.pad(scale, ((0, 0), (0, pad_lanes)))
            shift = jnp.pad(shift, ((0, 0), (0, pad_lanes)))
            lanes = BW + pad_lanes

    sublane = _sublane_pack(itemsize)
    row_bytes = lanes * itemsize
    ts = _choose_row_tile(rows, row_bytes, target_tile_bytes, sublane)
    grid = (pl.cdiv(rows, ts),)

    size = rows * lanes
    cost = pl.CostEstimate(
        flops=2 * size,
        transcendentals=0,
        bytes_accessed=(2 * size + 2 * lanes) * itemsize,
    )

    out = pl.pallas_call(
        _film_kernel,
        out_shape=jax.ShapeDtypeStruct((rows, lanes), dtype),
        grid=grid,
        in_specs=[
            pl.BlockSpec((ts, lanes), lambda s: (s, 0)),
            pl.BlockSpec((1, lanes), lambda s: (0, 0)),   # tiny broadcast row
            pl.BlockSpec((1, lanes), lambda s: (0, 0)),   # tiny broadcast row
        ],
        out_specs=pl.BlockSpec((ts, lanes), lambda s: (s, 0)),
        compiler_params=pltpu.CompilerParams(
            dimension_semantics=("parallel",),
            vmem_limit_bytes=vmem_limit_bytes),
        cost_estimate=cost,
    )(x2, scale, shift)

    if pad_lanes:
        out = out[:, :BW]
    return out.reshape(S, B, Wd)


# -------------------------------- module port ---------------------------------

class PointFiLMLayer:
    """JAX/Pallas port of the PyTorch PointFiLMLayer forward pass."""

    def __init__(self, tasks, width, conv=False, key=None):
        # reset_parameters() in the PyTorch module sets scales=1, shifts=0.
        # Initialize with non-trivial values so the kernel FMA is exercised.
        if key is None:
            key = jax.random.PRNGKey(0)
        k1, k2 = jax.random.split(key)
        self.scales = 1.0 + 0.1 * jax.random.normal(k1, (tasks, width), jnp.float32)
        self.shifts = 0.1 * jax.random.normal(k2, (tasks, width), jnp.float32)
        self.conv = conv
        self.width = width

    def __call__(self, x, task_labels, num_samples):
        # F.embedding(task_labels, table) == table[task_labels]  (glue in JAX)
        scale_values = self.scales[task_labels]  # (batch, width)
        shift_values = self.shifts[task_labels]  # (batch, width)
        if self.conv:
            return film_conv(x, scale_values, shift_values, num_samples)
        else:
            return film_dense(x, scale_values, shift_values)


if __name__ == "__main__":
    key = jax.random.PRNGKey(0)
    k_param_c, k_param_d, k_xc, k_xd = jax.random.split(key, 4)

    tasks = 5

    # ---------------- conv=True path ----------------
    batch, num_samples, C, H, W = 2, 2, 4, 16, 16
    layer_conv = PointFiLMLayer(tasks, C, conv=True, key=k_param_c)
    x_conv = jax.random.normal(k_xc, (num_samples * batch, C, H, W), jnp.float32)
    task_labels = jnp.array([1, 3], dtype=jnp.int32)

    y_conv = layer_conv(x_conv, task_labels, num_samples)
    jax.block_until_ready(y_conv)

    # pure-JAX reference (mirrors the torch forward exactly)
    sc = layer_conv.scales[task_labels].reshape(batch, C, 1, 1)
    sh = layer_conv.shifts[task_labels].reshape(batch, C, 1, 1)
    sc = jnp.tile(sc, (num_samples, 1, 1, 1))
    sh = jnp.tile(sh, (num_samples, 1, 1, 1))
    ref_conv = x_conv * sc + sh
    assert y_conv.shape == x_conv.shape and y_conv.dtype == x_conv.dtype
    assert jnp.allclose(y_conv, ref_conv, atol=1e-6)

    # ---------------- conv=False path ----------------
    num_samples_d, batch_d, width_d = 3, 2, 32
    layer_dense = PointFiLMLayer(tasks, width_d, conv=False, key=k_param_d)
    x_dense = jax.random.normal(k_xd, (num_samples_d, batch_d, width_d), jnp.float32)
    task_labels_d = jnp.array([0, 4], dtype=jnp.int32)

    y_dense = layer_dense(x_dense, task_labels_d, num_samples_d)
    jax.block_until_ready(y_dense)

    sc_d = layer_dense.scales[task_labels_d].reshape(1, batch_d, width_d)
    sh_d = layer_dense.shifts[task_labels_d].reshape(1, batch_d, width_d)
    ref_dense = x_dense * sc_d + sh_d
    assert y_dense.shape == x_dense.shape and y_dense.dtype == x_dense.dtype
    assert jnp.allclose(y_dense, ref_dense, atol=1e-6)

    # ------- conv=False with foldable sample dim (lane-fold code path) -------
    num_samples_f = 4
    x_fold = jax.random.normal(k_xd, (num_samples_f, batch_d, width_d), jnp.float32)
    y_fold = layer_dense(x_fold, task_labels_d, num_samples_f)
    jax.block_until_ready(y_fold)
    ref_fold = x_fold * sc_d + sh_d
    assert jnp.allclose(y_fold, ref_fold, atol=1e-6)

    print("KERNEL_OK")
</pallas_src>

<mosaic_0001>
module attributes {stable_mosaic.version = 11 : i64} {
  func.func @_film_kernel(%arg0: i32, %arg1: memref<8x256xf32, #tpu.memory_space<vmem>>, %arg2: memref<8x1xf32, #tpu.memory_space<vmem>>, %arg3: memref<8x1xf32, #tpu.memory_space<vmem>>, %arg4: memref<8x256xf32, #tpu.memory_space<vmem>>) attributes {dimension_semantics = [#tpu.dimension_semantics<parallel>], iteration_bounds = array<i64: 2>, scalar_prefetch = 0 : i64, scratch_operands = 0 : i64, tpu.core_type = #tpu.core_type<tc>, window_params = [{transform_indices = @transform_0, window_bounds = array<i64: 8, 256>}, {transform_indices = @transform_1, window_bounds = array<i64: 8, 1>}, {transform_indices = @transform_2, window_bounds = array<i64: 8, 1>}, {transform_indices = @transform_3, window_bounds = array<i64: 8, 256>}]} {
    %c0 = arith.constant 0 : index
    %c0_0 = arith.constant 0 : index
    %0 = vector.load %arg1[%c0, %c0_0] : memref<8x256xf32, #tpu.memory_space<vmem>>, vector<8x256xf32>
    %c0_1 = arith.constant 0 : index
    %c0_2 = arith.constant 0 : index
    %1 = vector.load %arg2[%c0_1, %c0_2] : memref<8x1xf32, #tpu.memory_space<vmem>>, vector<8x1xf32>
    %2 = vector.broadcast %1 : vector<8x1xf32> to vector<8x256xf32>
    %3 = arith.mulf %0, %2 : vector<8x256xf32>
    %c0_3 = arith.constant 0 : index
    %c0_4 = arith.constant 0 : index
    %4 = vector.load %arg3[%c0_3, %c0_4] : memref<8x1xf32, #tpu.memory_space<vmem>>, vector<8x1xf32>
    %5 = vector.broadcast %4 : vector<8x1xf32> to vector<8x256xf32>
    %6 = arith.addf %3, %5 : vector<8x256xf32>
    %c0_5 = arith.constant 0 : index
    %c0_6 = arith.constant 0 : index
    %7 = vector.load %arg4[%c0_5, %c0_6] : memref<8x256xf32, #tpu.memory_space<vmem>>, vector<8x256xf32>
    tpu.vector_store %arg4[%c0_5, %c0_6], %6 {strides = array<i32>} : memref<8x256xf32, #tpu.memory_space<vmem>>, vector<8x256xf32>,
    return
  }
  func.func @transform_0(%arg0: i32) -> (i32, i32) {
    %c0_i32 = arith.constant 0 : i32
    %c0_i32_0 = arith.constant 0 : i32
    return %arg0, %c0_i32 : i32, i32
  }
  func.func @transform_1(%arg0: i32) -> (i32, i32) {
    %c0_i32 = arith.constant 0 : i32
    %c0_i32_0 = arith.constant 0 : i32
    return %arg0, %c0_i32 : i32, i32
  }
  func.func @transform_2(%arg0: i32) -> (i32, i32) {
    %c0_i32 = arith.constant 0 : i32
    %c0_i32_0 = arith.constant 0 : i32
    return %arg0, %c0_i32 : i32, i32
  }
  func.func @transform_3(%arg0: i32) -> (i32, i32) {
    %c0_i32 = arith.constant 0 : i32
    %c0_i32_0 = arith.constant 0 : i32
    return %arg0, %c0_i32 : i32, i32
  }
}

</mosaic_0001>

<bundles_post_ra>
// kernel: tpu_custom_call.1
= control target key start
LH: loop header
LB: loop body
LE: loop exit
PB: predicated region body
PF: predicated region fallthrough
CT: control target
= control target key end

     0   :  { %8 = vsyncpa [#allocation3], 0  ;;  %s561_s0 = inlined_call_operand.vmem [shape: f32[16,256], index: 0, kind: input, shape index: {}]   ;;  %s562_s1 = inlined_call_operand.vmem [shape: f32[16,1], index: 1, kind: input, shape index: {}]   ;;  %s563_s2 = inlined_call_operand.vmem [shape: f32[16,1], index: 2, kind: input, shape index: {}]   ;;  %s564_s3 = inlined_call_operand.hbm [shape: f32[16,256], index: 3, kind: output, shape index: {}]  }
   0x1   :  { %10 = vsyncpa [#allocation3 + $0x1], 0  ;;  %s462_s12 = smov 0   ;;  %s464_s13 = smov 0  }
   0x2   :  { %s466_s14 = smov 0   ;;  %s468_s15 = smov 0  }
   0x3 LB: > { %s483_s16 = sadd.s32 4294967295, %s438_s15   ;;  %s321_s17 = sadd.s32 4294967294, %s438_s15   ;;  %s438_s15 = sphi %s468_s15, %s570_s15   ;;  %s434_s14 = sphi %s466_s14, %s569_s14   ;;  %s430_s13 = sphi %s464_s13, %s568_s13   ;;  %s426_s12 = sphi %s462_s12, %s567_s12  }
   0x4   : > { %s487_s18 = sadd.s32 1, %s438_s15   ;;  %s101_s19 = sadd.s32 1, %s434_s14 }
   0x5   : > { %s98_s20 = ssub.s32 %s438_s15, %s487_s18  ;;  %p111_p0 = scmp.ne.s32.totalorder %s434_s14, %s430_s13 }
   0x6   : > { %p99_p1 = scmp.eq.s32.totalorder %s98_s20, 0  ;;  %p112_p2 = scmp.eq.s32.totalorder %s483_s16, 1 }
   0x7   : > { %p117_p3 = scmp.ne.s32.totalorder %s430_s13, %s426_s12  ;;  %p118_p4 = scmp.eq.s32.totalorder %s321_s17, 1 }
   0x8   : > { %s498_s21 = scalar_select %p99_p1, %s434_s14, %s101_s19  }
   0x9   : > { %p500_p5 = por %p112_p2, %p111_p0  ;;  %p504_p6 = por %p118_p4, %p117_p3 }
   0xa   : > { %p324_p7 = scmp.ge.s32.totalorder %s438_s15, 1  ;;  %p158_p8 = scmp.lt.s32.totalorder %s438_s15, 3 }
   0xc   : > { %p159_p9 = pnand %p324_p7, %p158_p8 }
   0xd   : > { %p190_p10 = scmp.lt.s32.totalorder (!%p159_p9), %s483_s16, 1  ;;  %s187_s5 = sand.u32 (!%p159_p9), 1, %s430_s13  }
   0xe   : > { %162 = sbr.rel (%p159_p9) target bundleno = 167 (0xa7), region = 32  ;;  %s325_s7 = sshll.u32 (!%p159_p9), %s187_s5, 4 }
   0xf   : > { %s336_s11 = sshll.u32 (!%p159_p9), %s483_s16, 8  ;;  %s189_s17 = scalar_lea.vmem (!%p159_p9), [#allocation2], %s325_s7 }
  0x10   : > { %s238_s19 = sshll.u32 (!%p159_p9), %s189_s17, 4  ;;  %s224_s26 = scalar_lea.sflag (!%p159_p9), [#allocation3], %s187_s5  ;;  %s239_s19 = int_to_ptr.vmem [resolvable:$true] %s238_s19 }
  0x11   : > { %s378_s27 = scalar_lea.vmem (!%p159_p9), %s239_s19, 256 }
  0x12   : > { %p379_p11 = scmp.ne.s32.totalorder (!%p159_p9), %s239_s19, %s378_s27 }
  0x13   : > { %v440_v0 = vmov 0   ;;  %s191_s24 = scalar_select %p190_p10, %s483_s16, 1 }
  0x14   : > { %377 = vset.pattern.permute.xlu0 %v440_v0  ;;  %p380_p12 = pnand %p379_p11, %p500_p5  ;;  %s441_s16 = smov [#allocation2]  }
  0x15   : > { %s328_s25 = sshll.u32 %s191_s24, 3  ;;  %s335_s6 = sshll.u32 %s191_s24, 4 }
  0x16   : > { %s198_s28 = scalar_lea.vmem %s562_s1, %s328_s25  ;;  %s202_s4 = scalar_lea.vmem %s563_s2, %s328_s25 }
  0x17   : > { %v205_v1 = vld [vmem:[%s198_s28] sm:$0xff]  ;;  %s194_s10 = scalar_lea.vmem %s561_s0, %s335_s6  ;;  %s526_s24 = scalar_lea.hbm %s564_s3, %s336_s11 }
  0x18   : > { %208 = vperm.xlu0 %377, %v205_v1   ;;  %v213_v2 = vld [vmem:[%s202_s4] sm:$0xff]  ;;  %v204_v5 = vld [vmem:[%s194_s10 + $0x8] sm:$0xff]  ;;  %p381_p13 = pneg %p380_p12  ;;  %s382_s28 = sshll.u32 %s441_s16, 4  ;;  %s383_s28 = int_to_ptr.vmem [resolvable:$false] %s382_s28 }
  0x19   : > { %v203_v4 = vld [vmem:[%s194_s10] sm:$0xff]  ;;  %s384_s29 = scalar_lea.vmem %s383_s28, 512  ;;  %p385_p0 = scmp.lt.s32.totalorder %s239_s19, %s383_s28 }
  0x1a   : > { %p386_p1 = scmp.lt.s32.totalorder %s384_s29, %s378_s27 }
  0x1c   : > { %216 = vperm.xlu0 %377, %v213_v2   ;;  %p387_p2 = por %p386_p1, %p385_p0 }
  0x1e   : > { %p388_p3 = pnand %p387_p2, %p381_p13 }
  0x93   : > { %v209_v3 = vpop.permute.xlu0 %208 }
  0x94   : > { %v211_v6 = vmul.f32 %v209_v3, %v203_v4  ;;  %v212_v7 = vmul.f32 %v209_v3, %v204_v5 }
  0x97   : > { %v217_v8 = vpop.permute.xlu0 %216 }
  0x98   : > { %v219_v9 = vadd.f32 %v217_v8, %v211_v6  ;;  %v220_v10 = vadd.f32 %v217_v8, %v212_v7 }
  0x9a   : > { %221 = vst [vmem:[%s189_s17] sm:$0xff] %v219_v9  ;;  %222 = vst [vmem:[%s189_s17 + $0x8] sm:$0xff] %v220_v10 }
  0x9b   : > { %391 = shalt.err (!%p388_p3)
}
  0x9c   : > { %s392_s30 = scalar_lea.hbm %s526_s24, 256  ;;  %s396_s6 = scalar_lea.hbm %s564_s3, 512 }
  0x9d   : > { %p393_p4 = scmp.ne.s32.totalorder %s526_s24, %s392_s30  ;;  %p397_p9 = scmp.lt.s32.totalorder %s526_s24, %s564_s3 }
  0x9e   : > { %p398_p10 = scmp.lt.s32.totalorder %s396_s6, %s392_s30 }
  0x9f   : > { %p394_p7 = pnand %p393_p4, %p500_p5 }
  0xa0   : > { %p399_p11 = por %p398_p10, %p397_p9 }
  0xa1   : > { %p395_p8 = pneg %p394_p7 }
  0xa3   : > { %p400_p12 = pnand %p399_p11, %p395_p8 }
  0xa5   : > { %403 = shalt.err (!%p400_p12)
}
  0xa6   : > { %337 = dma.vmem_to_hbm [thread:$0]  (%p500_p5), %s239_s19, 256, %s526_s24, %s224_s26  }
  0xa7 PF: > { %p343_p13 = scmp.ge.s32.totalorder %s438_s15, 2  ;;  %s250_s9 = sand.u32 1, %s426_s12  }
  0xa8   : > { %s251_s10 = scalar_lea.sflag [#allocation3], %s250_s9 }
  0xa9   : > { %p340_p0 = pnand %p343_p13, %p504_p6 }
  0xab   : > { %p341_p1 = pneg %p340_p0 }
  0xad   : > { %421 = dma.done.wait (%p341_p1), %s251_s10, 256  }
  0xae   : > { %423 = vsyncadd (%p341_p1), %s251_s10, 4294967040  ;;  %p13_p2 = scmp.ge.s32.totalorder %s487_s18, 4   ;;  %s567_s12 = smov %s430_s13 }
  0xaf   : > { %s568_s13 = smov %s434_s14  ;;  %s569_s14 = smov %s498_s21 }
  0xb0   : > { %s570_s15 = smov %s487_s18  ;;  %15 = sbr.rel (!%p13_p2) target bundleno = 3 (0x3), region = 73 }
  0xb5   :  { %256 = vsyncpa [#allocation3], 1 }
  0xb6   :  { %258 = vsyncpa [#allocation3 + $0x1], 1 }

</bundles_post_ra>
